<compile_context>
chip_gen: v7x
topology: tpu7x:2x2x1
jax: 0.10.0
libtpu: 0.0.40
codegen_flags: <defaults>
</compile_context>

<pallas_src>
import jax
import jax.numpy as jnp
from jax.experimental import pallas as pl
from jax.experimental.pallas import tpu as pltpu


def _gated_activation_kernel(x_ref, o_ref):
    # x_ref: (bB, 2, C, TILE_HW) VMEM block holding both halves.
    # o_ref: (bB, C, TILE_HW) VMEM output block.
    x = x_ref[...]
    x1 = x[:, 0]                                 # tanh half
    x2 = x[:, 1]                                 # sigmoid half
    gate = 1.0 / (1.0 + jnp.exp(-x2))            # sigmoid (exp -> EUP slot)
    o_ref[...] = jnp.tanh(x1) * gate


def _choose_tiles(B, C, HW, itemsize, target_block_bytes=2 << 20):
    """Pick (bB, tile_hw) so one fused input block carries ~target bytes.

    Keeps tile_hw a multiple of 128 (or the full HW), and keeps the
    double-buffered footprint (~3x input block) under every generation's
    default scoped VMEM limit.
    """
    row_bytes = 2 * C * HW * itemsize            # one batch, both halves, full HW
    if row_bytes >= target_block_bytes:
        # Large spatial extent: tile along HW only, 128-lane aligned.
        tile_hw = (target_block_bytes // (2 * C * itemsize)) // 128 * 128
        tile_hw = int(max(128, min(tile_hw, HW)))
        return 1, tile_hw
    # Small spatial extent: take the full HW and fold batches into the block.
    bB = int(max(1, min(B, target_block_bytes // max(row_bytes, 1))))
    # Keep at least 2 grid steps on non-trivial problems so v7x's 2 TCs both work.
    if bB >= B and B >= 2 and B * row_bytes > (2 << 20):
        bB = pl.cdiv(B, 2)
    return bB, HW


def gated_activation_forward(x, *, target_block_bytes=2 << 20):
    """x: (B, 2C, H, W) -> tanh(x[:, :C]) * sigmoid(x[:, C:]), shape (B, C, H, W)."""
    B, C2, H, W = x.shape
    assert C2 % 2 == 0, "channel dim must be even for chunk(2, dim=1)"
    C = C2 // 2
    HW = H * W

    # Contiguous reshape only (no transpose): input channel g*C + c maps to
    # (gate g, channel c), exactly matching torch.chunk(2, dim=1).
    x4 = x.reshape(B, 2, C, HW)

    itemsize = jnp.dtype(x.dtype).itemsize
    bB, tile_hw = _choose_tiles(B, C, HW, itemsize, target_block_bytes)
    grid = (pl.cdiv(B, bB), pl.cdiv(HW, tile_hw))

    out = pl.pallas_call(
        _gated_activation_kernel,
        out_shape=jax.ShapeDtypeStruct((B, C, HW), x.dtype),
        grid_spec=pl.GridSpec(
            grid=grid,
            in_specs=[
                pl.BlockSpec((bB, 2, C, tile_hw), lambda b, t: (b, 0, 0, t)),
            ],
            out_specs=pl.BlockSpec((bB, C, tile_hw), lambda b, t: (b, 0, t)),
        ),
        compiler_params=pltpu.CompilerParams(
            dimension_semantics=("parallel", "parallel")),
    )(x4)

    return out.reshape(B, C, H, W)


if __name__ == "__main__":
    # B=2, hidden=32 gated channels -> 64 input channels, 16x16 spatial.
    B, C, H, W = 2, 32, 16, 16

    key = jax.random.PRNGKey(0)
    x = jax.random.normal(key, (B, 2 * C, H, W), dtype=jnp.float32)

    out = gated_activation_forward(x)
    out = jax.block_until_ready(out)

    # Plain-JAX reference (same math as the torch module).
    x1, x2 = x[:, :C], x[:, C:]
    ref = jnp.tanh(x1) * jax.nn.sigmoid(x2)

    assert out.shape == (B, C, H, W)
    assert out.dtype == x.dtype
    assert bool(jnp.allclose(out, ref, rtol=1e-5, atol=1e-6))

    print("KERNEL_OK")
</pallas_src>

<mosaic_0001>
module attributes {stable_mosaic.version = 11 : i64} {
  func.func @_gated_activation_kernel(%arg0: i32, %arg1: i32, %arg2: memref<2x2x32x256xf32, #tpu.memory_space<vmem>>, %arg3: memref<2x32x256xf32, #tpu.memory_space<vmem>>) attributes {dimension_semantics = [#tpu.dimension_semantics<parallel>, #tpu.dimension_semantics<parallel>], iteration_bounds = array<i64: 1, 1>, scalar_prefetch = 0 : i64, scratch_operands = 0 : i64, tpu.core_type = #tpu.core_type<tc>, window_params = [{transform_indices = @transform_0, window_bounds = array<i64: 2, 2, 32, 256>}, {transform_indices = @transform_1, window_bounds = array<i64: 2, 32, 256>}]} {
    %c0 = arith.constant 0 : index
    %c0_0 = arith.constant 0 : index
    %c0_1 = arith.constant 0 : index
    %c0_2 = arith.constant 0 : index
    %0 = vector.load %arg2[%c0, %c0_0, %c0_1, %c0_2] : memref<2x2x32x256xf32, #tpu.memory_space<vmem>>, vector<2x2x32x256xf32>
    %1 = vector.extract_strided_slice %0 {offsets = [0, 0, 0, 0], sizes = [2, 1, 32, 256], strides = [1, 1, 1, 1]} : vector<2x2x32x256xf32> to vector<2x1x32x256xf32>
    %2 = vector.shape_cast %1 : vector<2x1x32x256xf32> to vector<2x32x256xf32>
    %3 = vector.extract_strided_slice %0 {offsets = [0, 1, 0, 0], sizes = [2, 1, 32, 256], strides = [1, 1, 1, 1]} : vector<2x2x32x256xf32> to vector<2x1x32x256xf32>
    %4 = vector.shape_cast %3 : vector<2x1x32x256xf32> to vector<2x32x256xf32>
    %cst = arith.constant 0.000000e+00 : f32
    %5 = vector.broadcast %cst : f32 to vector<2x32x256xf32>
    %6 = arith.subf %5, %4 : vector<2x32x256xf32>
    %7 = math.exp %6 : vector<2x32x256xf32>
    %cst_3 = arith.constant 1.000000e+00 : f32
    %8 = vector.broadcast %cst_3 : f32 to vector<2x32x256xf32>
    %9 = arith.addf %8, %7 : vector<2x32x256xf32>
    %cst_4 = arith.constant 1.000000e+00 : f32
    %10 = vector.broadcast %cst_4 : f32 to vector<2x32x256xf32>
    %11 = arith.divf %10, %9 : vector<2x32x256xf32>
    %12 = math.tanh %2 : vector<2x32x256xf32>
    %13 = arith.mulf %12, %11 : vector<2x32x256xf32>
    %c0_5 = arith.constant 0 : index
    %c0_6 = arith.constant 0 : index
    %c0_7 = arith.constant 0 : index
    %14 = vector.load %arg3[%c0_5, %c0_6, %c0_7] : memref<2x32x256xf32, #tpu.memory_space<vmem>>, vector<2x32x256xf32>
    tpu.vector_store %arg3[%c0_5, %c0_6, %c0_7], %13 {strides = array<i32>} : memref<2x32x256xf32, #tpu.memory_space<vmem>>, vector<2x32x256xf32>,
    return
  }
  func.func @transform_0(%arg0: i32, %arg1: i32) -> (i32, i32, i32, i32) {
    %c0_i32 = arith.constant 0 : i32
    %c0_i32_0 = arith.constant 0 : i32
    %c0_i32_1 = arith.constant 0 : i32
    return %arg0, %c0_i32, %c0_i32_0, %arg1 : i32, i32, i32, i32
  }
  func.func @transform_1(%arg0: i32, %arg1: i32) -> (i32, i32, i32) {
    %c0_i32 = arith.constant 0 : i32
    %c0_i32_0 = arith.constant 0 : i32
    return %arg0, %c0_i32, %arg1 : i32, i32, i32
  }
}

</mosaic_0001>

<bundles_post_ra>
// kernel: tpu_custom_call.1
= control target key start
LH: loop header
LB: loop body
LE: loop exit
PB: predicated region body
PF: predicated region fallthrough
CT: control target
= control target key end

     0   :  { %6 = vsyncpa [#allocation3], 0  ;;  %s414_s0 = inlined_call_operand.hbm [shape: f32[2,2,32,256], index: 0, kind: input, shape index: {}]   ;;  %s415_s1 = inlined_call_operand.hbm [shape: f32[2,32,256], index: 1, kind: output, shape index: {}]  }
   0x1   :  { %7 = vsyncpa [#allocation4], 0  ;;  %s364_s6 = smov [#allocation2]   ;;  %s316_s10 = scalar_lea.hbm %s414_s0, 4096 }
   0x2   :  { %s13_s7 = sshll.u32 %s364_s6, 4  ;;  %p317_p0 = scmp.ne.s32.totalorder %s414_s0, %s316_s10  ;;  %s14_s7 = int_to_ptr.vmem [resolvable:$true] %s13_s7 }
   0x3   :  { %p320_p1 = scmp.lt.u32.totalorder %s316_s10, %s414_s0 }
   0x5   :  { %p322_p2 = pnand %p320_p1, %p317_p0 }
   0x7   :  { %325 = shalt.err (!%p322_p2)
}
   0x8   :  { %s326_s15 = scalar_lea.vmem %s14_s7, 4096  ;;  %p331_p4 = scmp.lt.s32.totalorder %s14_s7, %s14_s7 }
   0x9   :  { %p327_p3 = scmp.ne.s32.totalorder %s14_s7, %s326_s15  ;;  %p332_p5 = scmp.lt.s32.totalorder %s326_s15, %s326_s15 }
   0xb   :  { %p333_p6 = por %p332_p5, %p331_p4 }
   0xd   :  { %p334_p7 = pnand %p333_p6, %p327_p3 }
   0xf   :  { %337 = shalt.err (!%p334_p7)
}
  0x10   :  { %s365_s16 = smov 256   ;;  %s366_s17 = smov 16  }
  0x11   :  { %19 = dma.hbm_to_vmem [thread:$0]  %s414_s0, 4096, %s14_s7, [#allocation3], %s365_s16, %s365_s16, %s366_s17  }
  0x12   :  { %360 = dma.done.wait [#allocation3], 4096  }
  0x13   :  { %361 = vsyncadd [#allocation3], 4294963200  ;;  %v23_v0 = vld [vmem:[#allocation2] sm:$0xff]  ;;  %v24_v2 = vld [vmem:[#allocation2 + $0x8] sm:$0xff]  ;;  %s367_s0 = smov [#allocation5]  }
  0x14   :  { %v31_v1 = vld [vmem:[#allocation2 + $0x40] sm:$0xff]  ;;  %v32_v4 = vld [vmem:[#allocation2 + $0x48] sm:$0xff]  ;;  %v25_v5 = vld [vmem:[#allocation2 + $0x10] sm:$0xff]  ;;  %220 = vtanh.f32 %v23_v0  ;;  %s204_s20 = sshll.u32 %s367_s0, 4  ;;  %s205_s20 = int_to_ptr.vmem [resolvable:$true] %s204_s20 }
  0x15   :  { %v55_v3 = vsub.f32 0.0, %v31_v1  ;;  %v33_v6 = vld [vmem:[#allocation2 + $0x50] sm:$0xff]  ;;  %v56_v7 = vsub.f32 0.0, %v32_v4  ;;  %v34_v9 = vld [vmem:[#allocation2 + $0x58] sm:$0xff]  ;;  %222 = vtanh.f32 %v24_v2  ;;  %v35_v12 = vld [vmem:[#allocation2 + $0x60] sm:$0xff]  ;;  %s338_s21 = scalar_lea.vmem %s205_s20, 2048  ;;  %p343_p9 = scmp.lt.s32.totalorder %s205_s20, %s205_s20 }
  0x16   :  { %v57_v8 = vsub.f32 0.0, %v33_v6  ;;  %v58_v11 = vsub.f32 0.0, %v34_v9  ;;  %v36_v13 = vld [vmem:[#allocation2 + $0x68] sm:$0xff]  ;;  %224 = vtanh.f32 %v25_v5  ;;  %v59_v16 = vsub.f32 0.0, %v35_v12  ;;  %v37_v19 = vld [vmem:[#allocation2 + $0x70] sm:$0xff]  ;;  %v38_v20 = vld [vmem:[#allocation2 + $0x78] sm:$0xff]  ;;  %p339_p8 = scmp.ne.s32.totalorder %s205_s20, %s338_s21  ;;  %p344_p10 = scmp.lt.s32.totalorder %s338_s21, %s338_s21 }
  0x17   :  { %v71_v10 = vmul.f32 1.442695, %v55_v3  ;;  %v73_v14 = vmul.f32 1.442695, %v56_v7  ;;  %v60_v18 = vsub.f32 0.0, %v36_v13  ;;  %v61_v22 = vsub.f32 0.0, %v37_v19 }
  0x18   :  { %v75_v15 = vmul.f32 1.442695, %v57_v8  ;;  %v77_v17 = vmul.f32 1.442695, %v58_v11  ;;  %v79_v21 = vmul.f32 1.442695, %v59_v16  ;;  %p345_p11 = por %p344_p10, %p343_p9 }
  0x19   :  { %226 = vpow2.f32 %v71_v10  ;;  %v47_v23 = vld [vmem:[#allocation2 + $0xc0] sm:$0xff]  ;;  %v26_v24 = vld [vmem:[#allocation2 + $0x18] sm:$0xff]  ;;  %v81_v25 = vmul.f32 1.442695, %v60_v18  ;;  %v62_v26 = vsub.f32 0.0, %v38_v20  ;;  %v28_v30 = vld [vmem:[#allocation2 + $0x28] sm:$0xff] }
  0x1a   :  { %228 = vpow2.f32 %v73_v14  ;;  %v27_v27 = vld [vmem:[#allocation2 + $0x20] sm:$0xff]  ;;  %v83_v28 = vmul.f32 1.442695, %v61_v22  ;;  %v63_v29 = vsub.f32 0.0, %v47_v23  ;;  %v29_v34 = vld [vmem:[#allocation2 + $0x30] sm:$0xff]  ;;  %v48_v37 = vld [vmem:[#allocation2 + $0xc8] sm:$0xff]  ;;  %p346_p12 = pnand %p345_p11, %p339_p8 }
  0x1b   :  { %230 = vpow2.f32 %v75_v15  ;;  %v85_v31 = vmul.f32 1.442695, %v62_v26  ;;  %v64_v43 = vsub.f32 0.0, %v48_v37  ;;  %v49_v46 = vld [vmem:[#allocation2 + $0xd0] sm:$0xff]  ;;  %v30_v51 = vld [vmem:[#allocation2 + $0x38] sm:$0xff]  ;;  %v51_v59 = vld [vmem:[#allocation2 + $0xe0] sm:$0xff] }
  0x1c   :  { %232 = vpow2.f32 %v77_v17  ;;  %v87_v35 = vmul.f32 1.442695, %v63_v29  ;;  %v65_v54 = vsub.f32 0.0, %v49_v46  ;;  %v50_v55 = vld [vmem:[#allocation2 + $0xd8] sm:$0xff]  ;;  %v39_v62 = vld [vmem:[#allocation2 + $0x80] sm:$0xff]  ;;  %v52_v2 = vld [vmem:[#allocation2 + $0xe8] sm:$0xff] }
  0x1d   :  { %234 = vpow2.f32 %v79_v21  ;;  %v89_v53 = vmul.f32 1.442695, %v64_v43  ;;  %v66_v63 = vsub.f32 0.0, %v50_v55  ;;  %v67_v5 = vsub.f32 0.0, %v51_v59  ;;  %v53_v11 = vld [vmem:[#allocation2 + $0xf0] sm:$0xff]  ;;  %v54_v17 = vld [vmem:[#allocation2 + $0xf8] sm:$0xff] }
  0x1e   :  { %236 = vtanh.f32 %v26_v24  ;;  %v221_v32 = vpop.eup %220  ;;  %v91_v1 = vmul.f32 1.442695, %v65_v54  ;;  %v68_v10 = vsub.f32 0.0, %v52_v2  ;;  %v69_v20 = vsub.f32 0.0, %v53_v11  ;;  %v40_v23 = vld [vmem:[#allocation2 + $0x88] sm:$0xff]  ;;  %v42_v43 = vld [vmem:[#allocation2 + $0x98] sm:$0xff] }
  0x1f   :  { %238 = vpow2.f32 %v81_v25  ;;  %v393_v33 = vpop.eup %222  ;;  %v93_v9 = vmul.f32 1.442695, %v66_v63  ;;  %v95_v16 = vmul.f32 1.442695, %v67_v5  ;;  %v45_v54 = vld [vmem:[#allocation2 + $0xb0] sm:$0xff] }
  0x20   :  { %240 = vtanh.f32 %v27_v27  ;;  %v395_v36 = vpop.eup %224  ;;  %v97_v24 = vmul.f32 1.442695, %v68_v10  ;;  %v70_v27 = vsub.f32 0.0, %v54_v17 }
  0x21   :  { %242 = vpow2.f32 %v83_v28 }
  0x22   :  { %244 = vtanh.f32 %v28_v30  ;;  %v101_v37 = vmul.f32 1.442695, %v70_v27 }
  0x23   :  { %v227_v38 = vpop.eup %226  ;;  %246 = vpow2.f32 %v85_v31  ;;  %v99_v31 = vmul.f32 1.442695, %v69_v20 }
  0x24   :  { %v229_v39 = vpop.eup %228  ;;  %v103_v40 = vadd.f32 1.0, %v227_v38  ;;  %248 = vtanh.f32 %v29_v34 }
  0x25   :  { %v231_v41 = vpop.eup %230  ;;  %v104_v42 = vadd.f32 1.0, %v229_v39  ;;  %250 = vpow2.f32 %v87_v35 }
  0x26   :  { %v233_v44 = vpop.eup %232  ;;  %252 = vrcp.f32 %v103_v40  ;;  %v105_v45 = vadd.f32 1.0, %v231_v41 }
  0x27   :  { %v235_v47 = vpop.eup %234  ;;  %254 = vrcp.f32 %v104_v42  ;;  %v106_v48 = vadd.f32 1.0, %v233_v44 }
  0x28   :  { %v237_v49 = vpop.eup %236  ;;  %256 = vrcp.f32 %v105_v45  ;;  %v107_v50 = vadd.f32 1.0, %v235_v47  ;;  %v43_v45 = vld [vmem:[#allocation2 + $0xa0] sm:$0xff] }
  0x29   :  { %v239_v52 = vpop.eup %238  ;;  %258 = vrcp.f32 %v106_v48  ;;  %v44_v48 = vld [vmem:[#allocation2 + $0xa8] sm:$0xff] }
  0x2a   :  { %v241_v56 = vpop.eup %240  ;;  %260 = vrcp.f32 %v107_v50  ;;  %v108_v57 = vadd.f32 1.0, %v239_v52 }
  0x2b   :  { %v243_v58 = vpop.eup %242  ;;  %262 = vtanh.f32 %v30_v51 }
  0x2c   :  { %v245_v60 = vpop.eup %244  ;;  %264 = vrcp.f32 %v108_v57  ;;  %v109_v61 = vadd.f32 1.0, %v243_v58 }
  0x2d   :  { %v247_v0 = vpop.eup %246  ;;  %266 = vpow2.f32 %v89_v53 }
  0x2e   :  { %v249_v3 = vpop.eup %248  ;;  %268 = vrcp.f32 %v109_v61  ;;  %v110_v4 = vadd.f32 1.0, %v247_v0 }
  0x2f   :  { %v251_v6 = vpop.eup %250  ;;  %270 = vtanh.f32 %v39_v62 }
  0x30   :  { %v253_v7 = vpop.eup %252  ;;  %272 = vrcp.f32 %v110_v4  ;;  %v111_v8 = vadd.f32 1.0, %v251_v6 }
  0x31   :  { %v255_v12 = vpop.eup %254  ;;  %v167_v13 = vmul.f32 %v253_v7, %v221_v32  ;;  %274 = vpow2.f32 %v91_v1 }
  0x32   :  { %v257_v14 = vpop.eup %256  ;;  %v168_v15 = vmul.f32 %v255_v12, %v393_v33  ;;  %276 = vrcp.f32 %v111_v8 }
  0x33   :  { %v259_v18 = vpop.eup %258  ;;  %183 = vst [vmem:[#allocation5] sm:$0xff] %v167_v13  ;;  %v169_v19 = vmul.f32 %v257_v14, %v395_v36  ;;  %278 = vpow2.f32 %v93_v9  ;;  %v41_v36 = vld [vmem:[#allocation2 + $0x90] sm:$0xff] }
  0x34   :  { %v261_v21 = vpop.eup %260  ;;  %184 = vst [vmem:[#allocation5 + $0x8] sm:$0xff] %v168_v15  ;;  %v170_v22 = vmul.f32 %v259_v18, %v237_v49  ;;  %280 = vpow2.f32 %v95_v16 }
  0x35   :  { %v263_v25 = vpop.eup %262  ;;  %185 = vst [vmem:[#allocation5 + $0x10] sm:$0xff] %v169_v19  ;;  %v171_v26 = vmul.f32 %v261_v21, %v241_v56  ;;  %282 = vtanh.f32 %v40_v23  ;;  %v46_v56 = vld [vmem:[#allocation2 + $0xb8] sm:$0xff] }
  0x36   :  { %v265_v28 = vpop.eup %264  ;;  %186 = vst [vmem:[#allocation5 + $0x18] sm:$0xff] %v170_v22  ;;  %284 = vpow2.f32 %v97_v24 }
  0x37   :  { %v267_v29 = vpop.eup %266  ;;  %187 = vst [vmem:[#allocation5 + $0x20] sm:$0xff] %v171_v26  ;;  %v172_v30 = vmul.f32 %v265_v28, %v245_v60 }
  0x38   :  { %v269_v32 = vpop.eup %268  ;;  %v112_v33 = vadd.f32 1.0, %v267_v29 }
  0x39   :  { %v271_v34 = vpop.eup %270  ;;  %188 = vst [vmem:[#allocation5 + $0x28] sm:$0xff] %v172_v30  ;;  %v173_v35 = vmul.f32 %v269_v32, %v249_v3 }
  0x3a   :  { %v273_v38 = vpop.eup %272  ;;  %286 = vrcp.f32 %v112_v33 }
  0x3b   :  { %v275_v39 = vpop.eup %274  ;;  %189 = vst [vmem:[#allocation5 + $0x30] sm:$0xff] %v173_v35  ;;  %v174_v40 = vmul.f32 %v273_v38, %v263_v25  ;;  %288 = vpow2.f32 %v99_v31 }
  0x3c   :  { %v277_v41 = vpop.eup %276  ;;  %v113_v42 = vadd.f32 1.0, %v275_v39  ;;  %290 = vtanh.f32 %v41_v36 }
  0x3d   :  { %190 = vst [vmem:[#allocation5 + $0x38] sm:$0xff] %v174_v40  ;;  %v175_v44 = vmul.f32 %v277_v41, %v271_v34  ;;  %292 = vpow2.f32 %v101_v37  ;;  %v279_v46 = vpop.eup %278 }
  0x3e   :  { %294 = vrcp.f32 %v113_v42  ;;  %v114_v47 = vadd.f32 1.0, %v279_v46  ;;  %v281_v49 = vpop.eup %280 }
  0x3f   :  { %191 = vst [vmem:[#allocation5 + $0x40] sm:$0xff] %v175_v44  ;;  %296 = vtanh.f32 %v42_v43  ;;  %v283_v50 = vpop.eup %282  ;;  %v115_v51 = vadd.f32 1.0, %v281_v49 }
  0x40   :  { %298 = vtanh.f32 %v43_v45  ;;  %v285_v52 = vpop.eup %284 }
  0x41   :  { %300 = vrcp.f32 %v114_v47  ;;  %v116_v53 = vadd.f32 1.0, %v285_v52 }
  0x42   :  { %302 = vtanh.f32 %v44_v48 }
  0x43   :  { %304 = vrcp.f32 %v115_v51 }
  0x44   :  { %v287_v55 = vpop.eup %286  ;;  %306 = vrcp.f32 %v116_v53 }
  0x45   :  { %v289_v57 = vpop.eup %288  ;;  %v176_v58 = vmul.f32 %v287_v55, %v283_v50  ;;  %308 = vtanh.f32 %v45_v54 }
  0x46   :  { %v291_v59 = vpop.eup %290  ;;  %v117_v60 = vadd.f32 1.0, %v289_v57  ;;  %310 = vtanh.f32 %v46_v56 }
  0x47   :  { %v293_v61 = vpop.eup %292  ;;  %192 = vst [vmem:[#allocation5 + $0x48] sm:$0xff] %v176_v58 }
  0x48   :  { %v295_v62 = vpop.eup %294  ;;  %312 = vrcp.f32 %v117_v60  ;;  %v118_v63 = vadd.f32 1.0, %v293_v61 }
  0x49   :  { %v297_v0 = vpop.eup %296  ;;  %v177_v1 = vmul.f32 %v295_v62, %v291_v59 }
  0x4a   :  { %v299_v2 = vpop.eup %298  ;;  %314 = vrcp.f32 %v118_v63 }
  0x4b   :  { %v301_v3 = vpop.eup %300  ;;  %193 = vst [vmem:[#allocation5 + $0x50] sm:$0xff] %v177_v1 }
  0x4c   :  { %v303_v4 = vpop.eup %302  ;;  %v178_v5 = vmul.f32 %v301_v3, %v297_v0 }
  0x4d   :  { %v305_v6 = vpop.eup %304 }
  0x4e   :  { %194 = vst [vmem:[#allocation5 + $0x58] sm:$0xff] %v178_v5  ;;  %v179_v7 = vmul.f32 %v305_v6, %v299_v2  ;;  %v307_v8 = vpop.eup %306 }
  0x4f   :  { %v309_v9 = vpop.eup %308  ;;  %v180_v10 = vmul.f32 %v307_v8, %v303_v4 }
  0x50   :  { %195 = vst [vmem:[#allocation5 + $0x60] sm:$0xff] %v179_v7  ;;  %v311_v11 = vpop.eup %310 }
  0x51   :  { %196 = vst [vmem:[#allocation5 + $0x68] sm:$0xff] %v180_v10 }
  0x52   :  { %v313_v12 = vpop.eup %312 }
  0x53   :  { %v181_v13 = vmul.f32 %v313_v12, %v309_v9 }
  0x54   :  { %v315_v14 = vpop.eup %314 }
  0x55   :  { %197 = vst [vmem:[#allocation5 + $0x70] sm:$0xff] %v181_v13  ;;  %v182_v15 = vmul.f32 %v315_v14, %v311_v11 }
  0x57   :  { %198 = vst [vmem:[#allocation5 + $0x78] sm:$0xff] %v182_v15 }
  0x58   :  { %349 = shalt.err (!%p346_p12)
}
  0x59   :  { %s350_s24 = scalar_lea.hbm %s415_s1, 2048 }
  0x5a   :  { %p351_p13 = scmp.ne.s32.totalorder %s415_s1, %s350_s24  ;;  %p354_p0 = scmp.lt.u32.totalorder %s350_s24, %s415_s1 }
  0x5c   :  { %p356_p1 = pnand %p354_p0, %p351_p13 }
  0x5e   :  { %359 = shalt.err (!%p356_p1)
}
  0x5f   :  { %210 = dma.vmem_to_hbm [thread:$0]  %s205_s20, 2048, %s415_s1, [#allocation4], %s365_s16, %s365_s16, %s366_s17  }
  0x60   :  { %362 = dma.done.wait [#allocation4], 2048  }
  0x61   :  { %363 = vsyncadd [#allocation4], 4294965248 }
  0x62   :  { %214 = vsyncpa [#allocation3], 1 }
  0x63   :  { %215 = vsyncpa [#allocation4], 1 }

</bundles_post_ra>
